<compile_context>
chip_gen: v5e
topology: v5e:2x2
jax: 0.10.0
libtpu: 0.0.40
codegen_flags: <defaults>
</compile_context>

<pallas_src>
import functools

import jax
import jax.numpy as jnp
from jax import lax
from jax.experimental import pallas as pl
from jax.experimental.pallas import tpu as pltpu


def _cdiv(a, b):
    return -(-a // b)


def _round_up(x, m):
    return _cdiv(x, m) * m


def _downsample_kernel(xm_ref, xe_ref, w00_ref, w01_ref, w10_ref, w11_ref,
                       b_ref, o_ref):
    """One (batch, output-row-block) grid step of the strided 3x3 conv.

    tr = output rows per block, Wp = padded packed width, Wo = output width.
      xm_ref : (1, tr, Wp, 4C)  packed rows r*tr .. r*tr+tr-1
      xe_ref : (1, 1,  Wp, 4C)  halo packed row r*tr+tr
      w00    : (C,  C)  tap (di=0, dj=0)  <- input channel block [C:2C]
      w01    : (2C, C)  tap (di=0, dj=1)  <- input channel block [0:2C]
      w10    : (2C, C)  tap (di=1, dj=0)  <- input channel block [C:3C]
      w11    : (4C, C)  tap (di=1, dj=1)  <- all input channel blocks
      b_ref  : (1, C)   bias (f32)
      o_ref  : (1, tr, Wo, C)  output rows (packed NHWC)
    """
    tr = xm_ref.shape[1]
    Wp = xm_ref.shape[2]
    Wo = o_ref.shape[2]
    C = o_ref.shape[3]

    w00 = w00_ref[...]
    w01 = w01_ref[...]
    w10 = w10_ref[...]
    w11 = w11_ref[...]
    bias = b_ref[...].astype(jnp.float32)                  # (1, C)

    def conv_rows(x0, x1):
        # x0: (m, Wp, 2C)  channel blocks [(ph=1,pw=0),(ph=1,pw=1)] of the di=0 rows
        # x1: (m, Wp, 4C)  all channel blocks of the di=1 rows
        m = x0.shape[0]
        # Wp is a sublane-tile multiple, so these reshapes are layout preserving.
        x0f = x0.reshape(m * Wp, 2 * C)
        x1f = x1.reshape(m * Wp, 4 * C)
        # dj = 0 taps: output column j <- packed column j.
        a0 = jnp.dot(x0f[:, C:], w00, preferred_element_type=jnp.float32)
        a0 = a0 + jnp.dot(x1f[:, C:3 * C], w10,
                          preferred_element_type=jnp.float32)
        # dj = 1 taps: output column j <- packed column j + 1.
        a1 = jnp.dot(x0f, w01, preferred_element_type=jnp.float32)
        a1 = a1 + jnp.dot(x1f, w11, preferred_element_type=jnp.float32)
        a0 = a0.reshape(m, Wp, C)
        a1 = a1.reshape(m, Wp, C)
        # One column realignment of the narrow f32 accumulator; bias folded here.
        return a0[:, :Wo, :] + a1[:, 1:Wo + 1, :] + bias

    # Output rows 0 .. tr-2: both row taps live in the main block.
    if tr > 1:
        body = conv_rows(xm_ref[0, 0:tr - 1, :, 0:2 * C],
                         xm_ref[0, 1:tr, :, :])
        o_ref[0, 0:tr - 1, :, :] = body.astype(o_ref.dtype)
    # Output row tr-1: the di=1 row is the halo row.
    last = conv_rows(xm_ref[0, tr - 1:tr, :, 0:2 * C], xe_ref[0])
    o_ref[0, tr - 1:tr, :, :] = last.astype(o_ref.dtype)


def downsampling_forward(x_nchw, weight, bias, *,
                         compute_dtype=jnp.bfloat16,
                         out_layout="NCHW",
                         max_block_rows=None,
                         single_buffer_weights=None,
                         vmem_budget_bytes=None):
    """DownSampling forward: Conv2d(C, C, k=3, stride=2, padding=1).

    x_nchw : (B, C, H, W)   (H, W even, as the PyTorch module's assert requires)
    weight : (C, C, 3, 3)   PyTorch OIHW
    bias   : (C,)
    returns: (B, C, H//2, W//2) in NCHW (or NHWC if out_layout == "NHWC").
    """
    B, C, H, W = x_nchw.shape
    assert weight.shape == (C, C, 3, 3) and bias.shape == (C,)
    assert H % 2 == 0 and W % 2 == 0, "DownSampling expects even H and W"
    Ho, Wo = H // 2, W // 2

    x_isz = jnp.dtype(compute_dtype).itemsize
    out_dtype = x_nchw.dtype
    out_isz = jnp.dtype(out_dtype).itemsize

    # Packed width (output width + 1 left-pad column), rounded up to a sublane-tile
    # multiple of the compute dtype so in-kernel reshapes never repack.
    sub = 8 * max(1, 4 // x_isz)
    Wp = _round_up(Wo + 1, sub)

    # ---- per-generation VMEM budget (v5e/v6e: 128 MiB, v7x: 64 MiB) -------------
    try:
        vmem_cap = int(getattr(pltpu.get_tpu_info(), "vmem_capacity_bytes", 0))
    except Exception:
        vmem_cap = 0
    if vmem_cap <= 0:
        vmem_cap = 64 * 2**20                      # conservative (v7x-sized)
    budget = vmem_budget_bytes if vmem_budget_bytes else int(vmem_cap * 0.70)

    w_bytes = 9 * C * C * x_isz + C * 4            # resident taps + f32 bias
    if single_buffer_weights is None:
        single_buffer_weights = w_bytes > (4 * 2**20)

    in_row = Wp * 4 * C * x_isz                    # one packed input row
    out_row = Wo * C * out_isz                     # one output row
    acc_row = Wp * C * 4                           # one f32 accumulator row
    fixed = (1 if single_buffer_weights else 2) * w_bytes + 2 * in_row + (1 << 20)
    per_row = 3 * in_row + 2 * out_row + 4 * acc_row
    tr = int(max(1, min(Ho, (budget - fixed) // per_row)))
    if max_block_rows is not None:
        tr = max(1, min(tr, int(max_block_rows)))

    # Keep the total step count even so both v7x TensorCores get equal work.
    nR = _cdiv(Ho, tr)
    if Ho > 1 and (B * nR) % 2 != 0:
        tr_alt = _cdiv(Ho, nR + 1)
        if _cdiv(Ho, tr_alt) > nR:
            tr = tr_alt
            nR = _cdiv(Ho, tr)
    Ho_pad = nR * tr                               # ragged tail handled by padding

    # ---- space-to-depth relayout (the only full pass over the activation) -------
    # xp[b, i+1, j+1, blk*C + c] = x[b, c, 2i+ph, 2j+pw] with block order
    # [(ph=1,pw=0), (ph=1,pw=1), (ph=0,pw=1), (ph=0,pw=0)]; row/col 0 are the only
    # zero padding the stride-2 k=3 conv ever reads.
    x6 = x_nchw.reshape(B, C, Ho, 2, Wo, 2)
    xt = jnp.transpose(x6, (0, 2, 4, 3, 5, 1))     # (B, Ho, Wo, ph, pw, C)
    xp = jnp.concatenate([xt[..., 1, 0, :], xt[..., 1, 1, :],
                          xt[..., 0, 1, :], xt[..., 0, 0, :]], axis=-1)
    xp = jnp.pad(xp, ((0, 0), (1, Ho_pad - Ho), (1, Wp - Wo - 1), (0, 0)))
    xp = xp.astype(compute_dtype)                  # (B, Ho_pad+1, Wp, 4C)

    # ---- weights: only the 9 structurally non-zero taps ------------------------
    wt = jnp.transpose(weight, (2, 3, 1, 0))       # (kh, kw, ci, co)
    w00 = wt[0, 0]                                                  # (C,  C)
    w01 = jnp.concatenate([wt[0, 1], wt[0, 2]], axis=0)             # (2C, C)
    w10 = jnp.concatenate([wt[2, 0], wt[1, 0]], axis=0)             # (2C, C)
    w11 = jnp.concatenate([wt[2, 1], wt[2, 2], wt[1, 2], wt[1, 1]],
                          axis=0)                                   # (4C, C)
    w00, w01, w10, w11 = (w.astype(compute_dtype) for w in (w00, w01, w10, w11))
    b_mat = bias.reshape(1, C).astype(jnp.float32)

    est_vmem = fixed + tr * per_row + (2 << 20)
    vmem_limit = int(min(vmem_cap - 4 * 2**20, max(32 * 2**20, est_vmem)))

    cost = pl.CostEstimate(
        flops=2 * B * Ho * Wo * 9 * C * C,
        transcendentals=0,
        bytes_accessed=int(xp.size * x_isz + 9 * C * C * x_isz
                           + B * Ho * Wo * C * out_isz + C * 4),
    )

    def _res_spec(shape, enable_single):
        # Resident operand (constant index map). Single-buffered when large so a
        # big weight is not duplicated in VMEM (matters most on v7x's 64 MiB).
        imap = lambda b, r, _shape=shape: tuple(0 for _ in _shape)
        if enable_single:
            try:
                return pl.BlockSpec(shape, imap, pipeline_mode=pl.Buffered(1))
            except Exception:
                pass                                # fallback: default buffering
        return pl.BlockSpec(shape, imap)

    grid_spec = pltpu.PrefetchScalarGridSpec(
        num_scalar_prefetch=0,
        grid=(B, nR),
        in_specs=[
            # tr packed rows of this row block
            pl.BlockSpec((1, tr, Wp, 4 * C), lambda b, r: (b, r, 0, 0)),
            # one halo row (row (r+1)*tr); block size 1 => block index == row index
            pl.BlockSpec((1, 1, Wp, 4 * C), lambda b, r: (b, (r + 1) * tr, 0, 0)),
            # resident non-zero tap weights + bias
            _res_spec((C, C), single_buffer_weights),
            _res_spec((2 * C, C), single_buffer_weights),
            _res_spec((2 * C, C), single_buffer_weights),
            _res_spec((4 * C, C), single_buffer_weights),
            _res_spec((1, C), single_buffer_weights),
        ],
        out_specs=pl.BlockSpec((1, tr, Wo, C), lambda b, r: (b, r, 0, 0)),
    )

    out_nhwc = pl.pallas_call(
        _downsample_kernel,
        out_shape=jax.ShapeDtypeStruct((B, Ho_pad, Wo, C), out_dtype),
        grid_spec=grid_spec,
        compiler_params=pltpu.CompilerParams(
            dimension_semantics=("parallel", "parallel"),
            vmem_limit_bytes=vmem_limit),
        cost_estimate=cost,
    )(xp, xp, w00, w01, w10, w11, b_mat)

    if Ho_pad != Ho:
        out_nhwc = out_nhwc[:, :Ho]
    if out_layout == "NHWC":
        return out_nhwc
    out = jnp.transpose(out_nhwc, (0, 3, 1, 2))    # back to NCHW (module semantics)
    assert out.shape == (B, C, Ho, Wo)
    return out


if __name__ == "__main__":
    key = jax.random.PRNGKey(0)
    kx, kw, kb = jax.random.split(key, 3)

    B, C, H, W = 2, 4, 16, 16
    x = jax.random.normal(kx, (B, C, H, W), dtype=jnp.float32)

    # Deterministic synthetic parameters (PyTorch Conv2d shapes: OIHW + bias).
    fan_in = C * 3 * 3
    bound = 1.0 / (fan_in ** 0.5)
    weight = jax.random.uniform(kw, (C, C, 3, 3), jnp.float32, -bound, bound)
    bias = jax.random.uniform(kb, (C,), jnp.float32, -bound, bound)

    # XLA's native strided conv (same semantics as the PyTorch module).
    ref = lax.conv_general_dilated(
        x, weight, window_strides=(2, 2), padding=((1, 1), (1, 1)),
        dimension_numbers=("NCHW", "OIHW", "NCHW"),
    ) + bias[None, :, None, None]

    # 1) exact-semantics path (f32 compute), one whole-image row block.
    fwd_f32 = jax.jit(functools.partial(downsampling_forward,
                                        compute_dtype=jnp.float32))
    out_f32 = jax.block_until_ready(fwd_f32(x, weight, bias))
    assert out_f32.shape == (B, C, H // 2, W // 2)
    assert jnp.allclose(out_f32, ref, atol=1e-5, rtol=1e-5), float(
        jnp.max(jnp.abs(out_f32 - ref)))

    # 2) default bf16 fast path with forced small row blocks (tr=3 over Ho=8) to
    #    exercise the ragged tail + halo path; f32 accumulation bounds the error.
    fwd_bf16 = jax.jit(functools.partial(downsampling_forward, max_block_rows=3))
    out_bf16 = jax.block_until_ready(fwd_bf16(x, weight, bias))
    assert out_bf16.shape == (B, C, H // 2, W // 2)
    assert jnp.allclose(out_bf16, ref, atol=3e-2, rtol=3e-2), float(
        jnp.max(jnp.abs(out_bf16 - ref)))

    print("KERNEL_OK")
</pallas_src>

<mosaic_0001>
module attributes {stable_mosaic.version = 11 : i64} {
  func.func @_downsample_kernel(%arg0: i32, %arg1: i32, %arg2: memref<1x8x16x16xf32, #tpu.memory_space<vmem>>, %arg3: memref<1x1x16x16xf32, #tpu.memory_space<vmem>>, %arg4: memref<4x4xf32, #tpu.memory_space<vmem>>, %arg5: memref<8x4xf32, #tpu.memory_space<vmem>>, %arg6: memref<8x4xf32, #tpu.memory_space<vmem>>, %arg7: memref<16x4xf32, #tpu.memory_space<vmem>>, %arg8: memref<1x4xf32, #tpu.memory_space<vmem>>, %arg9: memref<1x8x8x4xf32, #tpu.memory_space<vmem>>) attributes {dimension_semantics = [#tpu.dimension_semantics<parallel>, #tpu.dimension_semantics<parallel>], iteration_bounds = array<i64: 2, 1>, scalar_prefetch = 0 : i64, scratch_operands = 0 : i64, tpu.core_type = #tpu.core_type<tc>, window_params = [{transform_indices = @transform_0, window_bounds = array<i64: 1, 8, 16, 16>}, {transform_indices = @transform_1, window_bounds = array<i64: 1, 1, 16, 16>}, {pipeline_mode = #tpu.pipeline_mode<synchronous>, transform_indices = @transform_2, window_bounds = array<i64: 4, 4>}, {pipeline_mode = #tpu.pipeline_mode<synchronous>, transform_indices = @transform_3, window_bounds = array<i64: 8, 4>}, {pipeline_mode = #tpu.pipeline_mode<synchronous>, transform_indices = @transform_4, window_bounds = array<i64: 8, 4>}, {pipeline_mode = #tpu.pipeline_mode<synchronous>, transform_indices = @transform_5, window_bounds = array<i64: 16, 4>}, {pipeline_mode = #tpu.pipeline_mode<synchronous>, transform_indices = @transform_6, window_bounds = array<i64: 1, 4>}, {transform_indices = @transform_7, window_bounds = array<i64: 1, 8, 8, 4>}]} {
    %c0 = arith.constant 0 : index
    %c0_0 = arith.constant 0 : index
    %0 = vector.load %arg4[%c0, %c0_0] : memref<4x4xf32, #tpu.memory_space<vmem>>, vector<4x4xf32>
    %c0_1 = arith.constant 0 : index
    %c0_2 = arith.constant 0 : index
    %1 = vector.load %arg5[%c0_1, %c0_2] : memref<8x4xf32, #tpu.memory_space<vmem>>, vector<8x4xf32>
    %c0_3 = arith.constant 0 : index
    %c0_4 = arith.constant 0 : index
    %2 = vector.load %arg6[%c0_3, %c0_4] : memref<8x4xf32, #tpu.memory_space<vmem>>, vector<8x4xf32>
    %c0_5 = arith.constant 0 : index
    %c0_6 = arith.constant 0 : index
    %3 = vector.load %arg7[%c0_5, %c0_6] : memref<16x4xf32, #tpu.memory_space<vmem>>, vector<16x4xf32>
    %c0_7 = arith.constant 0 : index
    %c0_8 = arith.constant 0 : index
    %4 = vector.load %arg8[%c0_7, %c0_8] : memref<1x4xf32, #tpu.memory_space<vmem>>, vector<1x4xf32>
    %c0_9 = arith.constant 0 : index
    %c0_10 = arith.constant 0 : index
    %c0_11 = arith.constant 0 : index
    %c0_12 = arith.constant 0 : index
    %5 = vector.load %arg2[%c0_9, %c0_10, %c0_11, %c0_12] : memref<1x8x16x16xf32, #tpu.memory_space<vmem>>, vector<1x7x16x8xf32>
    %6 = vector.shape_cast %5 : vector<1x7x16x8xf32> to vector<7x16x8xf32>
    %c0_13 = arith.constant 0 : index
    %c1 = arith.constant 1 : index
    %c0_14 = arith.constant 0 : index
    %c0_15 = arith.constant 0 : index
    %7 = vector.load %arg2[%c0_13, %c1, %c0_14, %c0_15] : memref<1x8x16x16xf32, #tpu.memory_space<vmem>>, vector<1x7x16x16xf32>
    %8 = vector.shape_cast %7 : vector<1x7x16x16xf32> to vector<7x16x16xf32>
    %9 = vector.shape_cast %6 : vector<7x16x8xf32> to vector<112x8xf32>
    %10 = vector.shape_cast %8 : vector<7x16x16xf32> to vector<112x16xf32>
    %11 = vector.extract_strided_slice %9 {offsets = [0, 4], sizes = [112, 4], strides = [1, 1]} : vector<112x8xf32> to vector<112x4xf32>
    %cst = arith.constant dense<0.000000e+00> : vector<112x4xf32>
    %12 = tpu.matmul %11, %0, %cst {dimension_numbers = #tpu.dot_dimension_numbers<[1], [0], [0], [1], [0, 0, 1, 1], [], []>} : vector<112x4xf32>, vector<4x4xf32>, vector<112x4xf32> -> vector<112x4xf32>
    %13 = vector.extract_strided_slice %10 {offsets = [0, 4], sizes = [112, 8], strides = [1, 1]} : vector<112x16xf32> to vector<112x8xf32>
    %cst_16 = arith.constant dense<0.000000e+00> : vector<112x4xf32>
    %14 = tpu.matmul %13, %2, %cst_16 {dimension_numbers = #tpu.dot_dimension_numbers<[1], [0], [0], [1], [0, 0, 1, 1], [], []>} : vector<112x8xf32>, vector<8x4xf32>, vector<112x4xf32> -> vector<112x4xf32>
    %15 = arith.addf %12, %14 : vector<112x4xf32>
    %cst_17 = arith.constant dense<0.000000e+00> : vector<112x4xf32>
    %16 = tpu.matmul %9, %1, %cst_17 {dimension_numbers = #tpu.dot_dimension_numbers<[1], [0], [0], [1], [0, 0, 1, 1], [], []>} : vector<112x8xf32>, vector<8x4xf32>, vector<112x4xf32> -> vector<112x4xf32>
    %cst_18 = arith.constant dense<0.000000e+00> : vector<112x4xf32>
    %17 = tpu.matmul %10, %3, %cst_18 {dimension_numbers = #tpu.dot_dimension_numbers<[1], [0], [0], [1], [0, 0, 1, 1], [], []>} : vector<112x16xf32>, vector<16x4xf32>, vector<112x4xf32> -> vector<112x4xf32>
    %18 = arith.addf %16, %17 : vector<112x4xf32>
    %19 = vector.shape_cast %15 : vector<112x4xf32> to vector<7x16x4xf32>
    %20 = vector.shape_cast %18 : vector<112x4xf32> to vector<7x16x4xf32>
    %21 = vector.extract_strided_slice %19 {offsets = [0, 0, 0], sizes = [7, 8, 4], strides = [1, 1, 1]} : vector<7x16x4xf32> to vector<7x8x4xf32>
    %22 = vector.extract_strided_slice %20 {offsets = [0, 1, 0], sizes = [7, 8, 4], strides = [1, 1, 1]} : vector<7x16x4xf32> to vector<7x8x4xf32>
    %23 = arith.addf %21, %22 : vector<7x8x4xf32>
    %24 = vector.shape_cast %4 : vector<1x4xf32> to vector<1x1x4xf32>
    %25 = vector.broadcast %24 : vector<1x1x4xf32> to vector<7x8x4xf32>
    %26 = arith.addf %23, %25 : vector<7x8x4xf32>
    %c0_19 = arith.constant 0 : index
    %c0_20 = arith.constant 0 : index
    %c0_21 = arith.constant 0 : index
    %c0_22 = arith.constant 0 : index
    %27 = vector.load %arg9[%c0_19, %c0_20, %c0_21, %c0_22] : memref<1x8x8x4xf32, #tpu.memory_space<vmem>>, vector<1x7x8x4xf32>
    %28 = vector.shape_cast %27 : vector<1x7x8x4xf32> to vector<7x8x4xf32>
    %29 = vector.shape_cast %26 : vector<7x8x4xf32> to vector<1x7x8x4xf32>
    tpu.vector_store %arg9[%c0_19, %c0_20, %c0_21, %c0_22], %29 {strides = array<i32>} : memref<1x8x8x4xf32, #tpu.memory_space<vmem>>, vector<1x7x8x4xf32>,
    %c0_23 = arith.constant 0 : index
    %c7 = arith.constant 7 : index
    %c0_24 = arith.constant 0 : index
    %c0_25 = arith.constant 0 : index
    %30 = vector.load %arg2[%c0_23, %c7, %c0_24, %c0_25] : memref<1x8x16x16xf32, #tpu.memory_space<vmem>>, vector<1x1x16x8xf32>
    %31 = vector.shape_cast %30 : vector<1x1x16x8xf32> to vector<1x16x8xf32>
    %c0_26 = arith.constant 0 : index
    %c0_27 = arith.constant 0 : index
    %c0_28 = arith.constant 0 : index
    %c0_29 = arith.constant 0 : index
    %32 = vector.load %arg3[%c0_26, %c0_27, %c0_28, %c0_29] : memref<1x1x16x16xf32, #tpu.memory_space<vmem>>, vector<1x1x16x16xf32>
    %33 = vector.shape_cast %32 : vector<1x1x16x16xf32> to vector<1x16x16xf32>
    %34 = vector.shape_cast %31 : vector<1x16x8xf32> to vector<16x8xf32>
    %35 = vector.shape_cast %33 : vector<1x16x16xf32> to vector<16x16xf32>
    %36 = vector.extract_strided_slice %34 {offsets = [0, 4], sizes = [16, 4], strides = [1, 1]} : vector<16x8xf32> to vector<16x4xf32>
    %cst_30 = arith.constant dense<0.000000e+00> : vector<16x4xf32>
    %37 = tpu.matmul %36, %0, %cst_30 {dimension_numbers = #tpu.dot_dimension_numbers<[1], [0], [0], [1], [0, 0, 1, 1], [], []>} : vector<16x4xf32>, vector<4x4xf32>, vector<16x4xf32> -> vector<16x4xf32>
    %38 = vector.extract_strided_slice %35 {offsets = [0, 4], sizes = [16, 8], strides = [1, 1]} : vector<16x16xf32> to vector<16x8xf32>
    %cst_31 = arith.constant dense<0.000000e+00> : vector<16x4xf32>
    %39 = tpu.matmul %38, %2, %cst_31 {dimension_numbers = #tpu.dot_dimension_numbers<[1], [0], [0], [1], [0, 0, 1, 1], [], []>} : vector<16x8xf32>, vector<8x4xf32>, vector<16x4xf32> -> vector<16x4xf32>
    %40 = arith.addf %37, %39 : vector<16x4xf32>
    %cst_32 = arith.constant dense<0.000000e+00> : vector<16x4xf32>
    %41 = tpu.matmul %34, %1, %cst_32 {dimension_numbers = #tpu.dot_dimension_numbers<[1], [0], [0], [1], [0, 0, 1, 1], [], []>} : vector<16x8xf32>, vector<8x4xf32>, vector<16x4xf32> -> vector<16x4xf32>
    %cst_33 = arith.constant dense<0.000000e+00> : vector<16x4xf32>
    %42 = tpu.matmul %35, %3, %cst_33 {dimension_numbers = #tpu.dot_dimension_numbers<[1], [0], [0], [1], [0, 0, 1, 1], [], []>} : vector<16x16xf32>, vector<16x4xf32>, vector<16x4xf32> -> vector<16x4xf32>
    %43 = arith.addf %41, %42 : vector<16x4xf32>
    %44 = vector.shape_cast %40 : vector<16x4xf32> to vector<1x16x4xf32>
    %45 = vector.shape_cast %43 : vector<16x4xf32> to vector<1x16x4xf32>
    %46 = vector.extract_strided_slice %44 {offsets = [0, 0, 0], sizes = [1, 8, 4], strides = [1, 1, 1]} : vector<1x16x4xf32> to vector<1x8x4xf32>
    %47 = vector.extract_strided_slice %45 {offsets = [0, 1, 0], sizes = [1, 8, 4], strides = [1, 1, 1]} : vector<1x16x4xf32> to vector<1x8x4xf32>
    %48 = arith.addf %46, %47 : vector<1x8x4xf32>
    %49 = vector.shape_cast %4 : vector<1x4xf32> to vector<1x1x4xf32>
    %50 = vector.broadcast %49 : vector<1x1x4xf32> to vector<1x8x4xf32>
    %51 = arith.addf %48, %50 : vector<1x8x4xf32>
    %c0_34 = arith.constant 0 : index
    %c7_35 = arith.constant 7 : index
    %c0_36 = arith.constant 0 : index
    %c0_37 = arith.constant 0 : index
    %52 = vector.load %arg9[%c0_34, %c7_35, %c0_36, %c0_37] : memref<1x8x8x4xf32, #tpu.memory_space<vmem>>, vector<1x1x8x4xf32>
    %53 = vector.shape_cast %52 : vector<1x1x8x4xf32> to vector<1x8x4xf32>
    %54 = vector.shape_cast %51 : vector<1x8x4xf32> to vector<1x1x8x4xf32>
    tpu.vector_store %arg9[%c0_34, %c7_35, %c0_36, %c0_37], %54 {strides = array<i32>} : memref<1x8x8x4xf32, #tpu.memory_space<vmem>>, vector<1x1x8x4xf32>,
    return
  }
  func.func @transform_0(%arg0: i32, %arg1: i32) -> (i32, i32, i32, i32) {
    %c0_i32 = arith.constant 0 : i32
    %c0_i32_0 = arith.constant 0 : i32
    %c0_i32_1 = arith.constant 0 : i32
    return %arg0, %arg1, %c0_i32, %c0_i32_0 : i32, i32, i32, i32
  }
  func.func @transform_1(%arg0: i32, %arg1: i32) -> (i32, i32, i32, i32) {
    %c1_i32 = arith.constant 1 : i32
    %0 = arith.addi %arg1, %c1_i32 : i32
    %c8_i32 = arith.constant 8 : i32
    %1 = arith.muli %0, %c8_i32 : i32
    %c0_i32 = arith.constant 0 : i32
    %c0_i32_0 = arith.constant 0 : i32
    %c0_i32_1 = arith.constant 0 : i32
    return %arg0, %1, %c0_i32, %c0_i32_0 : i32, i32, i32, i32
  }
  func.func @transform_2(%arg0: i32, %arg1: i32) -> (i32, i32) {
    %c0_i32 = arith.constant 0 : i32
    %c0_i32_0 = arith.constant 0 : i32
    %c0_i32_1 = arith.constant 0 : i32
    return %c0_i32, %c0_i32_0 : i32, i32
  }
  func.func @transform_3(%arg0: i32, %arg1: i32) -> (i32, i32) {
    %c0_i32 = arith.constant 0 : i32
    %c0_i32_0 = arith.constant 0 : i32
    %c0_i32_1 = arith.constant 0 : i32
    return %c0_i32, %c0_i32_0 : i32, i32
  }
  func.func @transform_4(%arg0: i32, %arg1: i32) -> (i32, i32) {
    %c0_i32 = arith.constant 0 : i32
    %c0_i32_0 = arith.constant 0 : i32
    %c0_i32_1 = arith.constant 0 : i32
    return %c0_i32, %c0_i32_0 : i32, i32
  }
  func.func @transform_5(%arg0: i32, %arg1: i32) -> (i32, i32) {
    %c0_i32 = arith.constant 0 : i32
    %c0_i32_0 = arith.constant 0 : i32
    %c0_i32_1 = arith.constant 0 : i32
    return %c0_i32, %c0_i32_0 : i32, i32
  }
  func.func @transform_6(%arg0: i32, %arg1: i32) -> (i32, i32) {
    %c0_i32 = arith.constant 0 : i32
    %c0_i32_0 = arith.constant 0 : i32
    %c0_i32_1 = arith.constant 0 : i32
    return %c0_i32, %c0_i32_0 : i32, i32
  }
  func.func @transform_7(%arg0: i32, %arg1: i32) -> (i32, i32, i32, i32) {
    %c0_i32 = arith.constant 0 : i32
    %c0_i32_0 = arith.constant 0 : i32
    %c0_i32_1 = arith.constant 0 : i32
    return %arg0, %arg1, %c0_i32, %c0_i32_0 : i32, i32, i32, i32
  }
}

</mosaic_0001>

<bundles_post_ra>
// kernel: downsampling_forward.1
= control target key start
LH: loop header
LB: loop body
LE: loop exit
PB: predicated region body
PF: predicated region fallthrough
CT: control target
= control target key end

     0   :  { %s1356_s24 = smov 0   ;;  %s1358_s25 = smov 0   ;;  %s1568_s0 = inlined_call_operand.vmem [shape: f32[2,9,16,16], index: 0, kind: input, shape index: {}, may-alias: {0,1}]   ;;  %s1569_s1 = inlined_call_operand.vmem [shape: f32[2,9,16,16], index: 1, kind: input, shape index: {}, may-alias: {0,1}]   ;;  %s1570_s2 = inlined_call_operand.vmem [shape: f32[4,4], index: 2, kind: input, shape index: {}]   ;;  %s1571_s3 = inlined_call_operand.vmem [shape: f32[8,4], index: 3, kind: input, shape index: {}]   ;;  %s1572_s4 = inlined_call_operand.vmem [shape: f32[8,4], index: 4, kind: input, shape index: {}]   ;;  %s1573_s5 = inlined_call_operand.vmem [shape: f32[16,4], index: 5, kind: input, shape index: {}]   ;;  %s1574_s6 = inlined_call_operand.vmem [shape: f32[1,4], index: 6, kind: input, shape index: {}]   ;;  %s1575_s7 = inlined_call_operand.vmem [shape: f32[2,8,8,4], index: 7, kind: output, shape index: {}]  }
   0x1   :  { %s1360_s26 = smov 0  }
   0x2 LB: > { %s29_s27 = sadd.s32 1, %s1309_s25  ;;  %p1169_p0 = scmp.ge.s32.totalorder %s1313_s26, 1  ;;  %s1313_s26 = sphi %s1360_s26, %s17_s26   ;;  %s1309_s25 = sphi %s1358_s25, %s1577_s25   ;;  %s1305_s24 = sphi %s1356_s24, %s1576_s24  }
   0x3   : > { %p31_p1 = scmp.ge.s32.totalorder %s29_s27, 2  ;;  %p293_p2 = scmp.lt.s32.totalorder %s1313_s26, 3 }
   0x5   : > { %s1579_s27 = smov (%p31_p1, %s29_s27), 0  ;;  %p294_p3 = pnand %p1169_p0, %p293_p2 }
   0x6   : > { %p356_p4 = scmp.lt.s32.totalorder (!%p294_p3), %s1305_s24, 1  ;;  %s1315_s9 = smov (!%p294_p3), 124  }
   0x7   : > { %297 = sbr.rel (%p294_p3) target bundleno = 386 (0x182), region = 48 }
   0xc   : > { %s1581_s24 = smov (!%p356_p4, %s1305_s24), 1  ;;  %v398_v8 = vld [vmem:[%s1573_s5 + $0x8] sm:$0xff]  ;;  %vm471_vm0 = vcmask 64512   ;;  %v397_v9 = vld [vmem:[%s1573_s5] sm:$0xff]  ;;  %vm679_vm1 = vcmask 130048   ;;  %vm623_vm2 = vcmask 1043456  }
   0xd   : > { %s1262_s28 = smul.u32 144, %s1581_s24  ;;  %722 = vmatpush.msra.mxu2 %v398_v8  ;;  %v395_v10 = vld [vmem:[%s1571_s3] sm:$0xff]  ;;  %vm594_vm3 = vcmask 31744   ;;  %vm868_vm4 = vcmask 1046528  }
   0xe   : > { %810 = vmatpush.msra.mxu3 %v395_v10  ;;  %v396_v14 = vld [vmem:[%s1572_s4] sm:$0xff] }
   0xf   : > { %s1382_s8 = scalar_lea.vmem %s1568_s0, %s1262_s28  ;;  %723 = vmatpush.msra.mxu2 %v397_v9  ;;  %515 = vmatpush.msra.mxu0 %v396_v14  ;;  %s1260_s18 = sadd.s32 128, %s1262_s28  ;;  %v394_v20 = vld [vmem:[%s1570_s2] sm:$0xf] }
  0x10   : > { %v1174_v0 = vld [vmem:[%s1382_s8 + $0x10] sm:$0xff]  ;;  %v1175_v1 = vld [vmem:[%s1382_s8 + $0x18] sm:$0xff]  ;;  %v1176_v2 = vld [vmem:[%s1382_s8 + $0x20] sm:$0xff]  ;;  %1008 = vmatpush.msrb.mxu3 %v398_v8  ;;  %s381_s21 = scalar_lea.vmem %s1569_s1, %s1260_s18  ;;  %1202 = vmatpush.msk.msra.mxu1 %vm623_vm2, %v394_v20  ;;  %s1261_s28 = sshll.u32 %s1581_s24, 6 }
  0x11   : > { %443 = vrot.lane.b32.xlu0 %v1174_v0, %s1315_s9  ;;  %445 = vrot.lane.b32.xlu1 %v1175_v1, %s1315_s9  ;;  %v400_v3 = vld [vmem:[%s1382_s8] sm:$0xff]  ;;  %v401_v4 = vld [vmem:[%s1382_s8 + $0x8] sm:$0xff]  ;;  %s1526_s10 = scalar_lea.vmem %s1575_s7, %s1261_s28 }
  0x12   : > { %447 = vrot.lane.b32.xlu2 %v1176_v2, %s1315_s9  ;;  %v1177_v5 = vld [vmem:[%s1382_s8 + $0x28] sm:$0xff]  ;;  %v406_v6 = vld [vmem:[%s1382_s8 + $0x30] sm:$0xff]  ;;  %v1179_v7 = vld [vmem:[%s1382_s8 + $0x38] sm:$0xff]  ;;  %1231 = vmatmul.msk.f32.vlgmr.msra.gmra.mxu3 %vm471_vm0, %v400_v3 }
  0x13   : > { %1217 = vmatmul.msk.f32.vlgmr.msra.gmra.mxu2 %vm679_vm1, %v1174_v0  ;;  %v1180_v11 = vld [vmem:[%s1382_s8 + $0x40] sm:$0xff]  ;;  %1009 = vmatpush.msrb.mxu3 %v397_v9  ;;  %v409_v12 = vld [vmem:[%s1382_s8 + $0x48] sm:$0xff]  ;;  %v1182_v13 = vld [vmem:[%s1382_s8 + $0x50] sm:$0xff] }
  0x14   : > { %1036 = vmatpush.msrb.mxu2 %v395_v10  ;;  %951 = vmatpush.msrb.mxu0 %v396_v14  ;;  %v1183_v15 = vld [vmem:[%s1382_s8 + $0x58] sm:$0xff]  ;;  %v412_v16 = vld [vmem:[%s1382_s8 + $0x60] sm:$0xff]  ;;  %v1185_v17 = vld [vmem:[%s1382_s8 + $0x68] sm:$0xff] }
  0x15   : > { %v1186_v18 = vld [vmem:[%s1382_s8 + $0x70] sm:$0xff]  ;;  %v924_v19 = vld [vmem:[%s381_s21] sm:$0xff]  ;;  %1249 = vmatpush.msk.msrb.mxu1 %vm623_vm2, %v394_v20  ;;  %v1246_v21 = vld [vmem:[%s1382_s8 + $0x78] sm:$0xff] }
  0x16   : > { %v925_v22 = vld [vmem:[%s381_s21 + $0x8] sm:$0xff]  ;;  %v1520_v9 = vld [vmem:[%s1574_s6] ss:$0 sm:$0xff] }
  0x19   : > { %566 = vrot.lane.b32.xlu0 %v400_v3, %s1315_s9  ;;  %568 = vrot.lane.b32.xlu1 %v401_v4, %s1315_s9 }
  0x1a   : > { %570 = vrot.lane.b32.xlu2 %v1174_v0, %s1315_s9  ;;  %1232 = vmatmul.msk.f32.gmra.mxu3 %vm471_vm0, %v401_v4 }
  0x1b   : > { %1218 = vmatmul.msk.f32.gmra.mxu2 %vm679_vm1, %v1175_v1 }
  0x21   : > { %572 = vrot.lane.b32.xlu1 %v1175_v1, %s1315_s9  ;;  %449 = vrot.lane.b32.xlu0 %v1177_v5, %s1315_s9 }
  0x22   : > { %451 = vrot.lane.b32.xlu2 %v406_v6, %s1315_s9  ;;  %1233 = vmatmul.msk.f32.gmra.mxu3 %vm471_vm0, %v1174_v0 }
  0x23   : > { %1219 = vmatmul.msk.f32.gmra.mxu2 %vm679_vm1, %v1176_v2 }
  0x29   : > { %574 = vrot.lane.b32.xlu0 %v1176_v2, %s1315_s9  ;;  %453 = vrot.lane.b32.xlu1 %v1179_v7, %s1315_s9 }
  0x2a   : > { %576 = vrot.lane.b32.xlu2 %v1177_v5, %s1315_s9  ;;  %1234 = vmatmul.msk.f32.gmra.mxu3 %vm471_vm0, %v1175_v1 }
  0x2b   : > { %1220 = vmatmul.msk.f32.gmra.mxu2 %vm679_vm1, %v1177_v5 }
  0x31   : > { %578 = vrot.lane.b32.xlu1 %v406_v6, %s1315_s9  ;;  %455 = vrot.lane.b32.xlu0 %v1180_v11, %s1315_s9 }
  0x32   : > { %457 = vrot.lane.b32.xlu2 %v409_v12, %s1315_s9  ;;  %1235 = vmatmul.msk.f32.gmra.mxu3 %vm471_vm0, %v1176_v2 }
  0x33   : > { %1221 = vmatmul.msk.f32.gmra.mxu2 %vm679_vm1, %v406_v6 }
  0x39   : > { %580 = vrot.lane.b32.xlu0 %v1179_v7, %s1315_s9  ;;  %459 = vrot.lane.b32.xlu1 %v1182_v13, %s1315_s9 }
  0x3a   : > { %582 = vrot.lane.b32.xlu2 %v1180_v11, %s1315_s9  ;;  %1236 = vmatmul.msk.f32.gmra.mxu3 %vm471_vm0, %v1177_v5 }
  0x3b   : > { %1222 = vmatmul.msk.f32.gmra.mxu2 %vm679_vm1, %v1179_v7 }
  0x41   : > { %584 = vrot.lane.b32.xlu1 %v409_v12, %s1315_s9  ;;  %461 = vrot.lane.b32.xlu0 %v1183_v15, %s1315_s9 }
  0x42   : > { %463 = vrot.lane.b32.xlu2 %v412_v16, %s1315_s9  ;;  %1237 = vmatmul.msk.f32.gmra.mxu3 %vm471_vm0, %v406_v6 }
  0x43   : > { %1223 = vmatmul.msk.f32.gmra.mxu2 %vm679_vm1, %v1180_v11 }
  0x49   : > { %586 = vrot.lane.b32.xlu0 %v1182_v13, %s1315_s9  ;;  %465 = vrot.lane.b32.xlu1 %v1185_v17, %s1315_s9 }
  0x4a   : > { %588 = vrot.lane.b32.xlu2 %v1183_v15, %s1315_s9  ;;  %1238 = vmatmul.msk.f32.gmra.mxu3 %vm471_vm0, %v1179_v7 }
  0x4b   : > { %1224 = vmatmul.msk.f32.gmra.mxu2 %vm679_vm1, %v409_v12 }
  0x51   : > { %590 = vrot.lane.b32.xlu1 %v412_v16, %s1315_s9  ;;  %467 = vrot.lane.b32.xlu0 %v1186_v18, %s1315_s9 }
  0x52   : > { %1239 = vmatmul.msk.f32.gmra.mxu3 %vm471_vm0, %v1180_v11  ;;  %469 = vrot.lane.b32.xlu2 %v1246_v21, %s1315_s9 }
  0x53   : > { %1225 = vmatmul.msk.f32.gmra.mxu2 %vm679_vm1, %v1182_v13 }
  0x59   : > { %592 = vrot.lane.b32.xlu0 %v1185_v17, %s1315_s9  ;;  %928 = vrot.lane.b32.xlu1 %v924_v19, %s1315_s9 }
  0x5a   : > { %1240 = vmatmul.msk.f32.gmra.mxu3 %vm471_vm0, %v409_v12  ;;  %960 = vrot.lane.b32.xlu2 %v1186_v18, %s1315_s9 }
  0x5b   : > { %1226 = vmatmul.msk.f32.gmra.mxu2 %vm679_vm1, %v1183_v15 }
  0x61   : > { %962 = vrot.lane.b32.xlu1 %v1246_v21, %s1315_s9  ;;  %930 = vrot.lane.b32.xlu0 %v925_v22, %s1315_s9 }
  0x62   : > { %1241 = vmatmul.msk.f32.gmra.mxu3 %vm471_vm0, %v1182_v13 }
  0x63   : > { %1227 = vmatmul.msk.f32.gmra.mxu2 %vm679_vm1, %v412_v16 }
  0x6a   : > { %1242 = vmatmul.msk.f32.gmra.mxu3 %vm471_vm0, %v1183_v15 }
  0x6b   : > { %1228 = vmatmul.msk.f32.gmra.mxu2 %vm679_vm1, %v1185_v17 }
  0x6c   : > { %v448_v26 = vpop.permute.xlu2 %447 }
  0x72   : > { %1243 = vmatmul.msk.f32.gmra.mxu3 %vm471_vm0, %v412_v16 }
  0x73   : > { %1229 = vmatmul.msk.f32.gmra.mxu2 %vm679_vm1, %v1186_v18 }
  0x74   : > { %v571_v28 = vpop.permute.xlu2 %570 }
  0x7a   : > { %1244 = vmatmul.msk.f32.gmra.mxu3 %vm471_vm0, %v1185_v17 }
  0x7b   : > { %1230 = vmatmul.msk.f32.gmra.mxu2 %vm679_vm1, %v1246_v21 }
  0x7c   : > { %v452_v31 = vpop.permute.xlu2 %451 }
  0x82   : > { %1252 = vmatmul.msk.f32.vlgmr.msrb.gmra.mxu3 %vm679_vm1, %v924_v19 }
  0x83   : > { %v444_v23 = vpop.permute.xlu0 %443  ;;  %v446_v24 = vpop.permute.xlu1 %445  ;;  %1254 = vmatmul.msk.f32.vlgmr.msrb.gmra.mxu2 %vm471_vm0, %v1186_v18 }
  0x84   : > { %1188 = vmatmul.msk.f32.vlgmr.msra.gmra.mxu0 %vm471_vm0, %v444_v23  ;;  %v577_v34 = vpop.permute.xlu2 %576 }
  0x8a   : > { %1253 = vmatmul.msk.f32.gmra.mxu3 %vm679_vm1, %v925_v22 }
  0x8b   : > { %v567_v25 = vpop.permute.xlu0 %566  ;;  %v569_v27 = vpop.permute.xlu1 %568  ;;  %1255 = vmatmul.msk.f32.gmra.mxu2 %vm471_vm0, %v1246_v21 }
  0x8c   : > { %1189 = vmatmul.msk.f32.gmra.mxu0 %vm471_vm0, %v446_v24  ;;  %1203 = vmatmul.msk.f32.vlgmr.msra.gmra.mxu1 %vm594_vm3, %v567_v25  ;;  %v458_v37 = vpop.permute.xlu2 %457 }
  0x93   : > { %v450_v29 = vpop.permute.xlu0 %449  ;;  %v573_v30 = vpop.permute.xlu1 %572 }
  0x94   : > { %1190 = vmatmul.msk.f32.gmra.mxu0 %vm471_vm0, %v448_v26  ;;  %1204 = vmatmul.msk.f32.gmra.mxu1 %vm594_vm3, %v569_v27  ;;  %v583_v40 = vpop.permute.xlu2 %582 }
  0x95   : > { %v812_v47 = vpop.f32.mrf.mxu3 }
  0x96   : > { %v725_v46 = vpop.f32.mrf.mxu2 }
  0x97   : > { %v813_v2 = vadd.f32 %v812_v47, %v725_v46 }
  0x99   : > { %v869_v4 = vrot.slane %v813_v2, 1 }
  0x9b   : > { %v575_v32 = vpop.permute.xlu0 %574  ;;  %v454_v33 = vpop.permute.xlu1 %453 }
  0x9c   : > { %1205 = vmatmul.msk.f32.gmra.mxu1 %vm594_vm3, %v571_v28  ;;  %1191 = vmatmul.msk.f32.gmra.mxu0 %vm471_vm0, %v450_v29  ;;  %v464_v43 = vpop.permute.xlu2 %463 }
  0x9d   : > { %v815_v51 = vpop.f32.mrf.mxu3 }
  0x9e   : > { %v728_v50 = vpop.f32.mrf.mxu2 }
  0x9f   : > { %v816_v3 = vadd.f32 %v815_v51, %v728_v50 }
  0xa1   : > { %v870_v5 = vrot.slane %v816_v3, 1 }
  0xa3   : > { %v456_v35 = vpop.permute.xlu0 %455  ;;  %v579_v36 = vpop.permute.xlu1 %578  ;;  %v871_v10 = vsel %vm868_vm4, %v869_v4, %v870_v5 }
  0xa4   : > { %1206 = vmatmul.msk.f32.gmra.mxu1 %vm594_vm3, %v573_v30  ;;  %1192 = vmatmul.msk.f32.gmra.mxu0 %vm471_vm0, %v452_v31  ;;  %v589_v48 = vpop.permute.xlu2 %588 }
  0xa5   : > { %v818_v55 = vpop.f32.mrf.mxu3 }
  0xa6   : > { %v731_v54 = vpop.f32.mrf.mxu2 }
  0xa7   : > { %v819_v17 = vadd.f32 %v818_v55, %v731_v54 }
  0xa9   : > { %v872_v21 = vrot.slane %v819_v17, 1 }
  0xab   : > { %v581_v38 = vpop.permute.xlu0 %580  ;;  %v460_v39 = vpop.permute.xlu1 %459 }
  0xac   : > { %1207 = vmatmul.msk.f32.gmra.mxu1 %vm594_vm3, %v575_v32  ;;  %1193 = vmatmul.msk.f32.gmra.mxu0 %vm471_vm0, %v454_v33  ;;  %v470_v53 = vpop.permute.xlu2 %469 }
  0xad   : > { %v821_v59 = vpop.f32.mrf.mxu3 }
  0xae   : > { %v734_v58 = vpop.f32.mrf.mxu2 }
  0xaf   : > { %v822_v18 = vadd.f32 %v821_v59, %v734_v58 }
  0xb1   : > { %v873_v22 = vrot.slane %v822_v18, 1 }
  0xb3   : > { %v462_v41 = vpop.permute.xlu0 %461  ;;  %v585_v42 = vpop.permute.xlu1 %584  ;;  %v874_v26 = vsel %vm868_vm4, %v872_v21, %v873_v22 }
  0xb4   : > { %1208 = vmatmul.msk.f32.gmra.mxu1 %vm594_vm3, %v577_v34  ;;  %1194 = vmatmul.msk.f32.gmra.mxu0 %vm471_vm0, %v456_v35  ;;  %v961_v60 = vpop.permute.xlu2 %960 }
  0xb5   : > { %v824_v1 = vpop.f32.mrf.mxu3 }
  0xb6   : > { %v737_v0 = vpop.f32.mrf.mxu2 }
  0xb7   : > { %v825_v33 = vadd.f32 %v824_v1, %v737_v0 }
  0xb9   : > { %v875_v35 = vrot.slane %v825_v33, 1 }
  0xbb   : > { %v587_v44 = vpop.permute.xlu0 %586  ;;  %v466_v45 = vpop.permute.xlu1 %465 }
  0xbc   : > { %1209 = vmatmul.msk.f32.gmra.mxu1 %vm594_vm3, %v579_v36  ;;  %1195 = vmatmul.msk.f32.gmra.mxu0 %vm471_vm0, %v458_v37 }
  0xbd   : > { %v827_v13 = vpop.f32.mrf.mxu3 }
  0xbe   : > { %v740_v12 = vpop.f32.mrf.mxu2 }
  0xbf   : > { %v828_v34 = vadd.f32 %v827_v13, %v740_v12 }
  0xc1   : > { %v876_v36 = vrot.slane %v828_v34, 1 }
  0xc3   : > { %v468_v49 = vpop.permute.xlu0 %467  ;;  %v591_v52 = vpop.permute.xlu1 %590 }
  0xc4   : > { %1210 = vmatmul.msk.f32.gmra.mxu1 %vm594_vm3, %v581_v38  ;;  %1196 = vmatmul.msk.f32.gmra.mxu0 %vm471_vm0, %v460_v39 }
  0xc5   : > { %v830_v20 = vpop.f32.mrf.mxu3 }
  0xc6   : > { %v743_v19 = vpop.f32.mrf.mxu2 }
  0xc7   : > { %v831_v47 = vadd.f32 %v830_v20, %v743_v19 }
  0xc9   : > { %v878_v51 = vrot.slane %v831_v47, 1 }
  0xcb   : > { %v593_v56 = vpop.permute.xlu0 %592  ;;  %v929_v57 = vpop.permute.xlu1 %928 }
  0xcc   : > { %1211 = vmatmul.msk.f32.gmra.mxu1 %vm594_vm3, %v583_v40  ;;  %1197 = vmatmul.msk.f32.gmra.mxu0 %vm471_vm0, %v462_v41 }
  0xcd   : > { %v833_v30 = vpop.f32.mrf.mxu3 }
  0xce   : > { %v746_v29 = vpop.f32.mrf.mxu2 }
  0xd3   : > { %v931_v61 = vpop.permute.xlu0 %930  ;;  %v963_v63 = vpop.permute.xlu1 %962 }
  0xd4   : > { %1212 = vmatmul.msk.f32.gmra.mxu1 %vm594_vm3, %v585_v42  ;;  %1198 = vmatmul.msk.f32.gmra.mxu0 %vm471_vm0, %v464_v43  ;;  %v877_v42 = vsel %vm868_vm4, %v875_v35, %v876_v36 }
  0xd5   : > { %v836_v41 = vpop.f32.mrf.mxu3 }
  0xd6   : > { %v749_v40 = vpop.f32.mrf.mxu2 }
  0xdc   : > { %1213 = vmatmul.msk.f32.gmra.mxu1 %vm594_vm3, %v587_v44  ;;  %1199 = vmatmul.msk.f32.gmra.mxu0 %vm471_vm0, %v466_v45 }
  0xdd   : > { %v839_v50 = vpop.f32.mrf.mxu3 }
  0xe4   : > { %1214 = vmatmul.msk.f32.gmra.mxu1 %vm594_vm3, %v589_v48  ;;  %1200 = vmatmul.msk.f32.gmra.mxu0 %vm471_vm0, %v468_v49  ;;  %v834_v48 = vadd.f32 %v833_v30, %v746_v29  ;;  %v752_v49 = vpop.f32.mrf.mxu2 }
  0xe5   : > { %v840_v0 = vadd.f32 %v839_v50, %v752_v49 }
  0xe7   : > { %v882_v2 = vrot.slane %v840_v0, 1 }
  0xec   : > { %1215 = vmatmul.msk.f32.gmra.mxu1 %vm594_vm3, %v591_v52  ;;  %1201 = vmatmul.msk.f32.gmra.mxu0 %vm471_vm0, %v470_v53  ;;  %v879_v52 = vrot.slane %v834_v48, 1  ;;  %v755_v59 = vpop.f32.mrf.mxu2 }
  0xf4   : > { %1216 = vmatmul.msk.f32.gmra.mxu1 %vm594_vm3, %v593_v56  ;;  %1247 = vmatmul.msk.f32.vlgmr.msrb.gmra.mxu0 %vm471_vm0, %v929_v57  ;;  %v880_v56 = vsel %vm868_vm4, %v878_v51, %v879_v52  ;;  %v758_v3 = vpop.f32.mrf.mxu2 }
  0xfc   : > { %1250 = vmatmul.msk.f32.vlgmr.msrb.gmra.mxu1 %vm594_vm3, %v961_v60  ;;  %1248 = vmatmul.msk.f32.gmra.mxu0 %vm471_vm0, %v931_v61  ;;  %v842_v60 = vpop.f32.mrf.mxu3 }
 0x101   : > { %v517_v62 = vpop.f32.mrf.mxu0 }
 0x104   : > { %1251 = vmatmul.msk.f32.gmra.mxu1 %vm594_vm3, %v963_v63  ;;  %v837_v63 = vadd.f32 %v836_v41, %v749_v40  ;;  %v845_v4 = vpop.f32.mrf.mxu3 }
 0x105   : > { %v846_v17 = vadd.f32 %v845_v4, %v758_v3 }
 0x106   : > { %v881_v1 = vrot.slane %v837_v63, 1 }
 0x107   : > { %v885_v19 = vrot.slane %v846_v17, 1 }
 0x109   : > { %v520_v6 = vpop.f32.mrf.mxu0  ;;  %v644_v7 = vpop.f32.mrf.mxu1 }
 0x10a   : > { %v645_v8 = vadd.f32 %v644_v7, %v517_v62 }
 0x10c   : > { %v897_v11 = vadd.f32 %v871_v10, %v645_v8  ;;  %v883_v8 = vsel %vm868_vm4, %v881_v1, %v882_v2 }
 0x10e   : > { %v907_v14 = vadd.f32 %v1520_v9, %v897_v11 }
 0x110   : > { %914 = vst.msk [vmem:[%s1526_s10] sm:$0xff] %vm594_vm3, %v907_v14  ;;  %v761_v14 = vpop.f32.mrf.mxu2 }
 0x111   : > { %v522_v15 = vpop.f32.mrf.mxu0  ;;  %v647_v16 = vpop.f32.mrf.mxu1 }
 0x112   : > { %v843_v16 = vadd.f32 %v842_v60, %v755_v59 }
 0x114   : > { %v884_v18 = vrot.slane %v843_v16, 1 }
 0x119   : > { %v649_v23 = vpop.f32.mrf.mxu1  ;;  %v525_v24 = vpop.f32.mrf.mxu0 }
 0x11a   : > { %v650_v25 = vadd.f32 %v649_v23, %v522_v15  ;;  %v848_v15 = vpop.f32.mrf.mxu3  ;;  %v886_v23 = vsel %vm868_vm4, %v884_v18, %v885_v19 }
 0x11b   : > { %v849_v30 = vadd.f32 %v848_v15, %v761_v14 }
 0x11c   : > { %v898_v27 = vadd.f32 %v874_v26, %v650_v25  ;;  %v764_v25 = vpop.f32.mrf.mxu2 }
 0x11d   : > { %v887_v34 = vrot.slane %v849_v30, 1 }
 0x11e   : > { %v908_v28 = vadd.f32 %v1520_v9, %v898_v27 }
 0x120   : > { %915 = vst.msk [vmem:[%s1526_s10 + $0x8] sm:$0xff] %vm594_vm3, %v908_v28 }
 0x121   : > { %v652_v31 = vpop.f32.mrf.mxu1  ;;  %v527_v32 = vpop.f32.mrf.mxu0 }
 0x122   : > { %v851_v26 = vpop.f32.mrf.mxu3 }
 0x123   : > { %v852_v31 = vadd.f32 %v851_v26, %v764_v25 }
 0x124   : > { %v1038_v33 = vpop.f32.mrf.mxu2 }
 0x125   : > { %v888_v35 = vrot.slane %v852_v31, 1 }
 0x129   : > { %v654_v37 = vpop.f32.mrf.mxu1  ;;  %v530_v38 = vpop.f32.mrf.mxu0 }
 0x12a   : > { %v655_v39 = vadd.f32 %v654_v37, %v527_v32  ;;  %v1011_v32 = vpop.f32.mrf.mxu3 }
 0x12c   : > { %v899_v43 = vadd.f32 %v877_v42, %v655_v39  ;;  %v889_v39 = vsel %vm868_vm4, %v887_v34, %v888_v35 }
 0x12e   : > { %v909_v44 = vadd.f32 %v1520_v9, %v899_v43  ;;  %v1041_v43 = vpop.f32.mrf.mxu2 }
 0x130   : > { %916 = vst.msk [vmem:[%s1526_s10 + $0x10] sm:$0xff] %vm594_vm3, %v909_v44 }
 0x131   : > { %v657_v45 = vpop.f32.mrf.mxu1  ;;  %v532_v46 = vpop.f32.mrf.mxu0 }
 0x132   : > { %v1014_v42 = vpop.f32.mrf.mxu3 }
 0x133   : > { %v1042_v47 = vadd.f32 %v1041_v43, %v1014_v42 }
 0x135   : > { %v1047_v49 = vrot.slane %v1042_v47, 1 }
 0x139   : > { %v659_v53 = vpop.f32.mrf.mxu1  ;;  %v535_v54 = vpop.f32.mrf.mxu0 }
 0x13a   : > { %v660_v55 = vadd.f32 %v659_v53, %v532_v46  ;;  %v1039_v46 = vadd.f32 %v1038_v33, %v1011_v32 }
 0x13c   : > { %v900_v57 = vadd.f32 %v880_v56, %v660_v55  ;;  %v1046_v48 = vrot.slane %v1039_v46, 1 }
 0x13e   : > { %v910_v58 = vadd.f32 %v1520_v9, %v900_v57  ;;  %v1048_v53 = vsel %vm868_vm4, %v1046_v48, %v1047_v49 }
 0x140   : > { %917 = vst.msk [vmem:[%s1526_s10 + $0x18] sm:$0xff] %vm594_vm3, %v910_v58 }
 0x141   : > { %v662_v61 = vpop.f32.mrf.mxu1  ;;  %v537_v62 = vpop.f32.mrf.mxu0 }
 0x149   : > { %v664_v5 = vpop.f32.mrf.mxu1  ;;  %v540_v6 = vpop.f32.mrf.mxu0 }
 0x14a   : > { %v665_v7 = vadd.f32 %v664_v5, %v537_v62 }
 0x14c   : > { %v901_v10 = vadd.f32 %v883_v8, %v665_v7 }
 0x14e   : > { %v911_v11 = vadd.f32 %v1520_v9, %v901_v10 }
 0x150   : > { %918 = vst.msk [vmem:[%s1526_s10 + $0x20] sm:$0xff] %vm594_vm3, %v911_v11 }
 0x151   : > { %v667_v12 = vpop.f32.mrf.mxu1  ;;  %v542_v13 = vpop.f32.mrf.mxu0 }
 0x159   : > { %v669_v20 = vpop.f32.mrf.mxu1  ;;  %v545_v21 = vpop.f32.mrf.mxu0 }
 0x15a   : > { %v670_v22 = vadd.f32 %v669_v20, %v542_v13 }
 0x15c   : > { %v902_v24 = vadd.f32 %v886_v23, %v670_v22 }
 0x15e   : > { %v912_v27 = vadd.f32 %v1520_v9, %v902_v24 }
 0x160   : > { %919 = vst.msk [vmem:[%s1526_s10 + $0x28] sm:$0xff] %vm594_vm3, %v912_v27 }
 0x161   : > { %v672_v28 = vpop.f32.mrf.mxu1  ;;  %v547_v29 = vpop.f32.mrf.mxu0 }
 0x169   : > { %v674_v36 = vpop.f32.mrf.mxu1  ;;  %v550_v37 = vpop.f32.mrf.mxu0 }
 0x16a   : > { %v675_v38 = vadd.f32 %v674_v36, %v547_v29 }
 0x16c   : > { %v903_v40 = vadd.f32 %v889_v39, %v675_v38 }
 0x16e   : > { %v913_v41 = vadd.f32 %v1520_v9, %v903_v40 }
 0x170   : > { %920 = vst.msk [vmem:[%s1526_s10 + $0x30] sm:$0xff] %vm594_vm3, %v913_v41 }
 0x171   : > { %v677_v44 = vpop.f32.mrf.mxu1  ;;  %v953_v45 = vpop.f32.mrf.mxu0 }
 0x179   : > { %v985_v50 = vpop.f32.mrf.mxu1  ;;  %v956_v51 = vpop.f32.mrf.mxu0 }
 0x17a   : > { %v986_v52 = vadd.f32 %v985_v50, %v953_v45 }
 0x17c   : > { %v1050_v54 = vadd.f32 %v1048_v53, %v986_v52 }
 0x17e   : > { %v1051_v55 = vadd.f32 %v1520_v9, %v1050_v54 }
 0x180   : > { %1256 = vst.msk [vmem:[%s1526_s10 + $0x38] sm:$0xff] %vm594_vm3, %v1051_v55 }
 0x181   : > { %v988_v56 = vpop.f32.mrf.mxu1 }
 0x182 PF: > { %s17_s26 = sadd.s32 1, %s1313_s26   ;;  %s1576_s24 = smov %s1309_s25 }
 0x183   : > { %p14_p5 = scmp.ge.s32.totalorder %s17_s26, 4   ;;  %s1577_s25 = smov %s1579_s27 }
 0x185   :  { %16 = sbr.rel (!%p14_p5) target bundleno = 2 (0x2), region = 84 }

</bundles_post_ra>
